<compile_context>
chip_gen: v7x
topology: tpu7x:2x2x1
jax: 0.10.0
libtpu: 0.0.40
codegen_flags: <defaults>
</compile_context>

<pallas_src>
import functools
import math

import jax
import jax.numpy as jnp
from jax import lax
from jax.experimental import pallas as pl
from jax.experimental.pallas import tpu as pltpu


def _round_up(a, b):
    return (a + b - 1) // b * b


def _sqdiff_sum_kernel(*refs, n_steps, num_slots, mask_from_block, valid_rows,
                       br, lanes, inv_total, weighted):
    """Accumulates sum((x - y)^2) over the k (last) grid axis.

    Weights (if any) are applied per-column only in the finalize step; ragged /
    overrun row blocks are zeroed with a row-id mask (no input padding).
    """
    if weighted:
        x_ref, y_ref, w_ref, o_ref, acc_ref = refs
    else:
        x_ref, y_ref, o_ref, acc_ref = refs
        w_ref = None

    k = pl.program_id(1)

    @pl.when(k == 0)
    def _():
        acc_ref[...] = jnp.zeros_like(acc_ref)

    d = x_ref[...].astype(jnp.float32) - y_ref[...].astype(jnp.float32)
    s = d * d

    def fold(v):
        # Leading-axis sum -> plain vreg adds; keeps the accumulator at (8, lanes).
        return v.reshape(br // 8, 8, lanes).sum(axis=0)

    if mask_from_block >= num_slots:
        # Every grid slot is fully valid: minimal hot loop (2 loads, 3 VALU ops).
        acc_ref[...] += fold(s)
    else:
        logical_blk = pl.program_id(0) * n_steps + k

        @pl.when(logical_blk < mask_from_block)
        def _():
            acc_ref[...] += fold(s)

        @pl.when(logical_blk >= mask_from_block)
        def _():
            # Partial last block (garbage beyond valid_rows) or overrun slot:
            # zero invalid rows before accumulating.
            rows = logical_blk * br + lax.broadcasted_iota(
                jnp.int32, (br, lanes), 0)
            acc_ref[...] += fold(jnp.where(rows < valid_rows, s, 0.0))

    @pl.when(k == n_steps - 1)
    def _():
        acc = acc_ref[...]
        if weighted:
            acc = acc * w_ref[...]            # column weights, applied once
        o_ref[...] = (jnp.sum(acc) * inv_total).reshape(1, 1, 1)


def customize_l2_loss(x, y, ratio=None, *,
                      vmem_budget_bytes=24 * 1024 * 1024, num_partials=2):
    """mean( (x - y)^2 * ratio[v] ) for x, y of shape (N, C, T, V, M).

    ratio=None (the default) matches the module's forward(), which always uses
    an all-ones ratio; a (V,)-shaped ratio enables the weighted path.
    """
    assert x.ndim == 5 and x.shape == y.shape, (x.shape, y.shape)
    N, C, T, V, M = x.shape
    total = N * C * T * V * M
    inv_total = 1.0 / float(total)

    R = N * C * T
    VM = V * M
    weighted = ratio is not None
    if weighted:
        ratio = jnp.asarray(ratio, jnp.float32)
        assert ratio.shape == (V,), ratio.shape
        w_vm = jnp.repeat(ratio, M)            # (VM,): col v*M+m -> ratio[v]

    # Lane-dense grouping: G rows of the (R, VM) view per kernel row so the
    # kernel's lane axis VM*G is a multiple of 128 (full vregs, dense DMA).
    G = 128 // math.gcd(VM, 128)
    LANES = VM * G
    R2 = R // G                                 # super-rows handled by the kernel
    R_main = R2 * G
    R_tail = R - R_main                         # < G rows: plain-JAX remainder

    x2 = x.reshape(R, VM)                       # free reshape (contiguous)
    y2 = y.reshape(R, VM)

    pieces = []

    if R2 > 0:
        if R_tail:
            # Only when R % G != 0: XLA materializes this prefix slice (one bulk
            # copy).  The common case (R % G == 0) below is zero-copy.
            xm = x2[:R_main].reshape(R2, LANES)
            ym = y2[:R_main].reshape(R2, LANES)
        else:
            xm = x2.reshape(R2, LANES)          # free reshape, no copy
            ym = y2.reshape(R2, LANES)

        # Block rows from a VMEM byte budget (2 inputs x 2 pipeline buffers),
        # LANES-aware, clamped so the parallel axis gets num_partials blocks.
        itemsize = jnp.dtype(x.dtype).itemsize
        br_budget = (vmem_budget_bytes // (4 * LANES * itemsize)) // 8 * 8
        br_parallel = _round_up(pl.cdiv(R2, max(1, num_partials)), 8)
        br = max(8, min(br_budget, br_parallel))

        n_blocks = pl.cdiv(R2, br)
        p = min(max(1, num_partials), n_blocks)
        n_steps = pl.cdiv(n_blocks, p)
        num_slots = p * n_steps
        # First logical block index whose rows need masking (partial / overrun).
        mask_from = (n_blocks - 1) if (R2 % br) else n_blocks

        def row_block_idx(pi, k):
            # Clamp so overrun grid slots re-read the last block (fully masked).
            return (jnp.minimum(pi * n_steps + k, n_blocks - 1), 0)

        in_specs = [pl.BlockSpec((br, LANES), row_block_idx),
                    pl.BlockSpec((br, LANES), row_block_idx)]
        args = [xm, ym]
        if weighted:
            in_specs.append(pl.BlockSpec((1, LANES), lambda pi, k: (0, 0)))
            args.append(jnp.tile(w_vm, G).reshape(1, LANES))

        kernel = functools.partial(
            _sqdiff_sum_kernel, n_steps=n_steps, num_slots=num_slots,
            mask_from_block=mask_from, valid_rows=R2, br=br, lanes=LANES,
            inv_total=inv_total, weighted=weighted)

        partials = pl.pallas_call(
            kernel,
            out_shape=jax.ShapeDtypeStruct((p, 1, 1), jnp.float32),
            grid_spec=pltpu.PrefetchScalarGridSpec(
                num_scalar_prefetch=0,
                grid=(p, n_steps),                       # reduction axis last
                in_specs=in_specs,
                out_specs=pl.BlockSpec((1, 1, 1), lambda pi, k: (pi, 0, 0)),
                scratch_shapes=[pltpu.VMEM((8, LANES), jnp.float32)]),
            compiler_params=pltpu.CompilerParams(
                dimension_semantics=("parallel", "arbitrary"),
                vmem_limit_bytes=48 * 1024 * 1024),      # <= v7x 64 MiB VMEM
        )(*args)
        pieces.append(jnp.sum(partials))                 # partials are pre-scaled

    if R_tail:
        dt = x2[R_main:].astype(jnp.float32) - y2[R_main:].astype(jnp.float32)
        st = dt * dt
        if weighted:
            st = st * w_vm[None, :]
        pieces.append(jnp.sum(st) * inv_total)

    out = pieces[0]
    for extra in pieces[1:]:
        out = out + extra
    return out


def _reference(x, y, ratio):
    return jnp.mean((x - y) ** 2 * ratio[None, None, None, :, None])


if __name__ == "__main__":
    key = jax.random.PRNGKey(0)
    k1, k2, k3, k4, k5, k6 = jax.random.split(key, 6)

    V, M = 15, 2

    # --- Test 1: module-faithful forward (ratio overridden to ones) ---------
    # R = 2*3*128 = 768 is a multiple of G=64 -> zero-copy path, all-ones fast
    # path, 2 parallel partials, masked partial last block.
    N, C, T = 2, 3, 128
    x = jax.random.normal(k1, (N, C, T, V, M), jnp.float32)
    y = jax.random.normal(k2, (N, C, T, V, M), jnp.float32)
    loss = jax.jit(customize_l2_loss)(x, y)
    loss = jax.block_until_ready(loss)
    assert loss.shape == (), loss.shape
    ref = _reference(x, y, jnp.ones((V,), jnp.float32))
    assert jnp.allclose(loss, ref, rtol=1e-5, atol=1e-6), (loss, ref)

    # --- Test 2: non-uniform ratio + ragged shape (mask + plain-JAX tail) ----
    ratio_init = 15.0 * jnp.array(
        [0.215443, 0.17178342, 0.15656174, 0.19168501, 0.2465594,
         0.31947552, 0.19463252, 0.2604469, 0.34040594, 0.18470985,
         0.28121841, 0.33644492, 0.18715863, 0.29536846, 0.36014678],
        jnp.float32)
    Nb, Cb, Tb = 2, 3, 300      # R = 1800 = 28*64 + 8 -> partial block + tail
    xb = jax.random.normal(k3, (Nb, Cb, Tb, V, M), jnp.float32)
    yb = jax.random.normal(k4, (Nb, Cb, Tb, V, M), jnp.float32)
    loss_b = jax.block_until_ready(customize_l2_loss(xb, yb, ratio_init))
    ref_b = _reference(xb, yb, ratio_init)
    assert jnp.allclose(loss_b, ref_b, rtol=1e-5, atol=1e-6), (loss_b, ref_b)

    # --- Test 3: larger input -> budget-limited blocks, multi-step reduction,
    #             odd block count (overrun-slot clamp), partial block + tail. ---
    Nc, Cc, Tc = 2, 3, 6000     # R2 = 562 super-rows -> 3 blocks over 2 partials
    xc = jax.random.normal(k5, (Nc, Cc, Tc, V, M), jnp.float32)
    yc = jax.random.normal(k6, (Nc, Cc, Tc, V, M), jnp.float32)
    loss_c = jax.block_until_ready(
        customize_l2_loss(xc, yc, ratio_init, vmem_budget_bytes=8 * 1024 * 1024))
    ref_c = _reference(xc, yc, ratio_init)
    assert jnp.allclose(loss_c, ref_c, rtol=1e-4, atol=1e-6), (loss_c, ref_c)

    print("KERNEL_OK")
</pallas_src>

<mosaic_0001>
module attributes {stable_mosaic.version = 11 : i64} {
  func.func @_sqdiff_sum_kernel(%arg0: i32, %arg1: i32, %arg2: memref<8x1920xf32, #tpu.memory_space<vmem>>, %arg3: memref<8x1920xf32, #tpu.memory_space<vmem>>, %arg4: memref<1x1x1xf32, #tpu.memory_space<vmem>>, %arg5: memref<8x1920xf32, #tpu.memory_space<vmem>>) attributes {dimension_semantics = [#tpu.dimension_semantics<parallel>, #tpu.dimension_semantics<arbitrary>], iteration_bounds = array<i64: 2, 1>, scalar_prefetch = 0 : i64, scratch_operands = 1 : i64, tpu.core_type = #tpu.core_type<tc>, window_params = [{transform_indices = @transform_0, window_bounds = array<i64: 8, 1920>}, {transform_indices = @transform_1, window_bounds = array<i64: 8, 1920>}, {transform_indices = @transform_2, window_bounds = array<i64: 1, 1, 1>}]} {
    %c0_i32 = arith.constant 0 : i32
    %0 = arith.cmpi eq, %arg1, %c0_i32 : i32
    %1 = arith.extui %0 : i1 to i32
    %c0_i32_0 = arith.constant 0 : i32
    %2 = arith.cmpi ne, %1, %c0_i32_0 : i32
    scf.if %2 {
      %cst = arith.constant 0.000000e+00 : f32
      %18 = vector.broadcast %cst : f32 to vector<8x1920xf32>
      %c0_10 = arith.constant 0 : index
      %c0_11 = arith.constant 0 : index
      %19 = vector.load %arg5[%c0_10, %c0_11] : memref<8x1920xf32, #tpu.memory_space<vmem>>, vector<8x1920xf32>
      tpu.vector_store %arg5[%c0_10, %c0_11], %18 {strides = array<i32>} : memref<8x1920xf32, #tpu.memory_space<vmem>>, vector<8x1920xf32>,
    } else {
    }
    %c0 = arith.constant 0 : index
    %c0_1 = arith.constant 0 : index
    %3 = vector.load %arg2[%c0, %c0_1] : memref<8x1920xf32, #tpu.memory_space<vmem>>, vector<8x1920xf32>
    %c0_2 = arith.constant 0 : index
    %c0_3 = arith.constant 0 : index
    %4 = vector.load %arg3[%c0_2, %c0_3] : memref<8x1920xf32, #tpu.memory_space<vmem>>, vector<8x1920xf32>
    %5 = arith.subf %3, %4 : vector<8x1920xf32>
    %6 = arith.mulf %5, %5 : vector<8x1920xf32>
    %c1_i32 = arith.constant 1 : i32
    %7 = arith.muli %arg0, %c1_i32 : i32
    %8 = arith.addi %7, %arg1 : i32
    %c1_i32_4 = arith.constant 1 : i32
    %9 = arith.cmpi slt, %8, %c1_i32_4 : i32
    %10 = arith.extui %9 : i1 to i32
    %c0_i32_5 = arith.constant 0 : i32
    %11 = arith.cmpi ne, %10, %c0_i32_5 : i32
    scf.if %11 {
      %c0_10 = arith.constant 0 : index
      %c0_11 = arith.constant 0 : index
      %18 = vector.load %arg5[%c0_10, %c0_11] : memref<8x1920xf32, #tpu.memory_space<vmem>>, vector<8x1920xf32>
      %19 = vector.shape_cast %6 : vector<8x1920xf32> to vector<1x8x1920xf32>
      %cst = arith.constant dense<0.000000e+00> : vector<8x1920xf32>
      %20 = vector.multi_reduction <add>, %19, %cst [0] : vector<1x8x1920xf32> to vector<8x1920xf32>
      %21 = arith.addf %18, %20 : vector<8x1920xf32>
      %c0_12 = arith.constant 0 : index
      %c0_13 = arith.constant 0 : index
      %22 = vector.load %arg5[%c0_12, %c0_13] : memref<8x1920xf32, #tpu.memory_space<vmem>>, vector<8x1920xf32>
      tpu.vector_store %arg5[%c0_12, %c0_13], %21 {strides = array<i32>} : memref<8x1920xf32, #tpu.memory_space<vmem>>, vector<8x1920xf32>,
    } else {
    }
    %c1_i32_6 = arith.constant 1 : i32
    %12 = arith.cmpi sge, %8, %c1_i32_6 : i32
    %13 = arith.extui %12 : i1 to i32
    %c0_i32_7 = arith.constant 0 : i32
    %14 = arith.cmpi ne, %13, %c0_i32_7 : i32
    scf.if %14 {
      %c8_i32 = arith.constant 8 : i32
      %18 = arith.muli %8, %c8_i32 : i32
      %19 = tpu.iota {dimensions = array<i32: 0>} : vector<8x1920xi32>
      %20 = vector.broadcast %18 : i32 to vector<8x1920xi32>
      %21 = arith.addi %20, %19 : vector<8x1920xi32>
      %c0_10 = arith.constant 0 : index
      %c0_11 = arith.constant 0 : index
      %22 = vector.load %arg5[%c0_10, %c0_11] : memref<8x1920xf32, #tpu.memory_space<vmem>>, vector<8x1920xf32>
      %c12_i32 = arith.constant 12 : i32
      %23 = vector.broadcast %c12_i32 : i32 to vector<8x1920xi32>
      %24 = arith.cmpi slt, %21, %23 : vector<8x1920xi32>
      %cst = arith.constant 0.000000e+00 : f32
      %25 = vector.broadcast %cst : f32 to vector<8x1920xf32>
      %26 = arith.select %24, %6, %25 : vector<8x1920xi1>, vector<8x1920xf32>
      %27 = vector.shape_cast %26 : vector<8x1920xf32> to vector<1x8x1920xf32>
      %cst_12 = arith.constant dense<0.000000e+00> : vector<8x1920xf32>
      %28 = vector.multi_reduction <add>, %27, %cst_12 [0] : vector<1x8x1920xf32> to vector<8x1920xf32>
      %29 = arith.addf %22, %28 : vector<8x1920xf32>
      %c0_13 = arith.constant 0 : index
      %c0_14 = arith.constant 0 : index
      %30 = vector.load %arg5[%c0_13, %c0_14] : memref<8x1920xf32, #tpu.memory_space<vmem>>, vector<8x1920xf32>
      tpu.vector_store %arg5[%c0_13, %c0_14], %29 {strides = array<i32>} : memref<8x1920xf32, #tpu.memory_space<vmem>>, vector<8x1920xf32>,
    } else {
    }
    %c0_i32_8 = arith.constant 0 : i32
    %15 = arith.cmpi eq, %arg1, %c0_i32_8 : i32
    %16 = arith.extui %15 : i1 to i32
    %c0_i32_9 = arith.constant 0 : i32
    %17 = arith.cmpi ne, %16, %c0_i32_9 : i32
    scf.if %17 {
      %c0_10 = arith.constant 0 : index
      %c0_11 = arith.constant 0 : index
      %18 = vector.load %arg5[%c0_10, %c0_11] : memref<8x1920xf32, #tpu.memory_space<vmem>>, vector<8x1920xf32>
      %19 = vector.shape_cast %18 : vector<8x1920xf32> to vector<1x8x1920xf32>
      %cst = arith.constant dense<0.000000e+00> : vector<1xf32>
      %20 = vector.multi_reduction <add>, %19, %cst [1, 2] : vector<1x8x1920xf32> to vector<1xf32>
      %21 = vector.shape_cast %20 : vector<1xf32> to vector<1x1x1xf32>
      %22 = vector.extract %21[0, 0, 0] : f32 from vector<1x1x1xf32>
      %cst_12 = arith.constant 4.34027788E-5 : f32
      %23 = arith.mulf %22, %cst_12 : f32
      %24 = vector.broadcast %23 : f32 to vector<1x1x1xf32>
      %c0_13 = arith.constant 0 : index
      %c0_14 = arith.constant 0 : index
      %c0_15 = arith.constant 0 : index
      %25 = vector.load %arg4[%c0_13, %c0_14, %c0_15] : memref<1x1x1xf32, #tpu.memory_space<vmem>>, vector<1x1x1xf32>
      tpu.vector_store %arg4[%c0_13, %c0_14, %c0_15], %24 {strides = array<i32>} : memref<1x1x1xf32, #tpu.memory_space<vmem>>, vector<1x1x1xf32>,
    } else {
    }
    return
  }
  func.func @transform_0(%arg0: i32, %arg1: i32) -> (i32, i32) {
    %c1_i32 = arith.constant 1 : i32
    %0 = arith.muli %arg0, %c1_i32 : i32
    %1 = arith.addi %0, %arg1 : i32
    %c1_i32_0 = arith.constant 1 : i32
    %2 = arith.minsi %1, %c1_i32_0 : i32
    %c0_i32 = arith.constant 0 : i32
    %c0_i32_1 = arith.constant 0 : i32
    return %2, %c0_i32 : i32, i32
  }
  func.func @transform_1(%arg0: i32, %arg1: i32) -> (i32, i32) {
    %c1_i32 = arith.constant 1 : i32
    %0 = arith.muli %arg0, %c1_i32 : i32
    %1 = arith.addi %0, %arg1 : i32
    %c1_i32_0 = arith.constant 1 : i32
    %2 = arith.minsi %1, %c1_i32_0 : i32
    %c0_i32 = arith.constant 0 : i32
    %c0_i32_1 = arith.constant 0 : i32
    return %2, %c0_i32 : i32, i32
  }
  func.func @transform_2(%arg0: i32, %arg1: i32) -> (i32, i32, i32) {
    %c0_i32 = arith.constant 0 : i32
    %c0_i32_0 = arith.constant 0 : i32
    %c0_i32_1 = arith.constant 0 : i32
    return %arg0, %c0_i32, %c0_i32_0 : i32, i32, i32
  }
}

</mosaic_0001>

<bundles_post_ra>
// kernel: customize_l2_loss.1
= control target key start
LH: loop header
LB: loop body
LE: loop exit
PB: predicated region body
PF: predicated region fallthrough
CT: control target
= control target key end

     0   :  { %s641_s9 = smov 0   ;;  %s643_s10 = smov 0   ;;  %s790_s0 = inlined_call_operand.vmem [shape: f32[12,1920], index: 0, kind: input, shape index: {}]   ;;  %s791_s1 = inlined_call_operand.vmem [shape: f32[12,1920], index: 1, kind: input, shape index: {}]   ;;  %s792_s2 = inlined_call_operand.vmem [shape: f32[2,1,1], index: 2, kind: output, shape index: {}]  }
   0x1   :  { %s645_s11 = smov 0  }
   0x2 LB: > { %s24_s12 = sadd.s32 1, %s619_s10  ;;  %p559_p0 = scmp.ge.s32.totalorder %s623_s11, 1  ;;  %s623_s11 = sphi %s645_s11, %s12_s11   ;;  %s619_s10 = sphi %s643_s10, %s794_s10   ;;  %s615_s9 = sphi %s641_s9, %s793_s9  }
   0x3   : > { %p26_p1 = scmp.ge.s32.totalorder %s24_s12, 2  ;;  %p158_p2 = scmp.lt.s32.totalorder %s623_s11, 3 }
   0x5   : > { %s796_s12 = smov (%p26_p1, %s24_s12), 0  ;;  %p159_p3 = pnand %p559_p0, %p158_p2 }
   0x6   : > { %p190_p4 = scmp.lt.s32.totalorder (!%p159_p3), %s615_s9, 1  ;;  %v625_v0 = vmov (!%p159_p3), 0.0   ;;  %p568_p5 = scmp.ge.s32.totalorder (!%p159_p3), %s615_s9, 1 }
   0x7   : > { %162 = sbr.rel (%p159_p3) target bundleno = 300 (0x12c), region = 28  ;;  %218 = vst [vmem:[#allocation2] sm:$0xff] (!%p159_p3), %v625_v0  ;;  %219 = vst [vmem:[#allocation2 + $0x8] sm:$0xff] (!%p159_p3), %v625_v0 }
   0x8   : > { %220 = vst [vmem:[#allocation2 + $0x10] sm:$0xff] (!%p159_p3), %v625_v0  ;;  %221 = vst [vmem:[#allocation2 + $0x18] sm:$0xff] (!%p159_p3), %v625_v0 }
   0x9   : > { %222 = vst [vmem:[#allocation2 + $0x20] sm:$0xff] (!%p159_p3), %v625_v0  ;;  %223 = vst [vmem:[#allocation2 + $0x28] sm:$0xff] (!%p159_p3), %v625_v0 }
   0xa   : > { %224 = vst [vmem:[#allocation2 + $0x30] sm:$0xff] (!%p159_p3), %v625_v0  ;;  %225 = vst [vmem:[#allocation2 + $0x38] sm:$0xff] (!%p159_p3), %v625_v0 }
   0xb   : > { %226 = vst [vmem:[#allocation2 + $0x40] sm:$0xff] (!%p159_p3), %v625_v0  ;;  %227 = vst [vmem:[#allocation2 + $0x48] sm:$0xff] (!%p159_p3), %v625_v0 }
   0xc   : > { %228 = vst [vmem:[#allocation2 + $0x50] sm:$0xff] (!%p159_p3), %v625_v0  ;;  %229 = vst [vmem:[#allocation2 + $0x58] sm:$0xff] (!%p159_p3), %v625_v0 }
   0xd   : > { %230 = vst [vmem:[#allocation2 + $0x60] sm:$0xff] (!%p159_p3), %v625_v0  ;;  %231 = vst [vmem:[#allocation2 + $0x68] sm:$0xff] (!%p159_p3), %v625_v0 }
   0xe   : > { %232 = vst [vmem:[#allocation2 + $0x70] sm:$0xff] %v625_v0  ;;  %s665_s13 = scalar_select %p190_p4, %s615_s9, 1 }
   0xf   : > { %v298_v61 = vld [vmem:[#allocation2] sm:$0xff] (!%p568_p5)  ;;  %v299_v62 = vld [vmem:[#allocation2 + $0x8] sm:$0xff] (!%p568_p5)  ;;  %v300_v63 = vld [vmem:[#allocation2 + $0x10] sm:$0xff] (!%p568_p5) }
  0x10   : > { %s193_s14 = scalar_select %p190_p4, %s665_s13, 1 }
  0x11   : > { %s213_s17 = scalar_lea.vmem %s792_s2, %s665_s13 }
  0x12   : > { %s573_s18 = smul.u32 120, %s193_s14 }
  0x14   : > { %s196_s21 = scalar_lea.vmem %s790_s0, %s573_s18  ;;  %s680_s24 = scalar_lea.vmem %s791_s1, %s573_s18 }
  0x15   : > { %v233_v1 = vld [vmem:[%s196_s21] sm:$0xff]  ;;  %v234_v2 = vld [vmem:[%s196_s21 + $0x8] sm:$0xff]  ;;  %v235_v3 = vld [vmem:[%s196_s21 + $0x10] sm:$0xff] }
  0x16   : > { %v236_v4 = vld [vmem:[%s196_s21 + $0x18] sm:$0xff]  ;;  %v237_v5 = vld [vmem:[%s196_s21 + $0x20] sm:$0xff]  ;;  %v238_v6 = vld [vmem:[%s196_s21 + $0x28] sm:$0xff] }
  0x17   : > { %v239_v7 = vld [vmem:[%s196_s21 + $0x30] sm:$0xff]  ;;  %v240_v8 = vld [vmem:[%s196_s21 + $0x38] sm:$0xff]  ;;  %v241_v9 = vld [vmem:[%s196_s21 + $0x40] sm:$0xff] }
  0x18   : > { %v242_v10 = vld [vmem:[%s196_s21 + $0x48] sm:$0xff]  ;;  %v243_v11 = vld [vmem:[%s196_s21 + $0x50] sm:$0xff]  ;;  %v244_v12 = vld [vmem:[%s196_s21 + $0x58] sm:$0xff] }
  0x19   : > { %v245_v13 = vld [vmem:[%s196_s21 + $0x60] sm:$0xff]  ;;  %v246_v14 = vld [vmem:[%s196_s21 + $0x68] sm:$0xff]  ;;  %v247_v15 = vld [vmem:[%s196_s21 + $0x70] sm:$0xff] }
  0x1a   : > { %v248_v16 = vld [vmem:[%s680_s24] sm:$0xff]  ;;  %v249_v17 = vld [vmem:[%s680_s24 + $0x8] sm:$0xff]  ;;  %v250_v18 = vld [vmem:[%s680_s24 + $0x10] sm:$0xff] }
  0x1b   : > { %v251_v19 = vld [vmem:[%s680_s24 + $0x18] sm:$0xff]  ;;  %v252_v20 = vld [vmem:[%s680_s24 + $0x20] sm:$0xff]  ;;  %v253_v21 = vld [vmem:[%s680_s24 + $0x28] sm:$0xff]  ;;  %v263_v22 = vsub.f32 %v233_v1, %v248_v16  ;;  %v264_v23 = vsub.f32 %v234_v2, %v249_v17  ;;  %v265_v24 = vsub.f32 %v235_v3, %v250_v18 }
  0x1c   : > { %v254_v25 = vld [vmem:[%s680_s24 + $0x30] sm:$0xff]  ;;  %v255_v26 = vld [vmem:[%s680_s24 + $0x38] sm:$0xff]  ;;  %v256_v27 = vld [vmem:[%s680_s24 + $0x40] sm:$0xff]  ;;  %v266_v28 = vsub.f32 %v236_v4, %v251_v19  ;;  %v267_v29 = vsub.f32 %v237_v5, %v252_v20  ;;  %v268_v30 = vsub.f32 %v238_v6, %v253_v21  ;;  %297 = sbr.rel (%p568_p5) target bundleno = 45 (0x2d), region = 36 }
  0x1d   : > { %v257_v31 = vld [vmem:[%s680_s24 + $0x48] sm:$0xff]  ;;  %v258_v32 = vld [vmem:[%s680_s24 + $0x50] sm:$0xff]  ;;  %v259_v33 = vld [vmem:[%s680_s24 + $0x58] sm:$0xff]  ;;  %v269_v34 = vsub.f32 %v239_v7, %v254_v25  ;;  %v270_v35 = vsub.f32 %v240_v8, %v255_v26  ;;  %v271_v36 = vsub.f32 %v241_v9, %v256_v27  ;;  %v694_v37 = vmul.f32 %v263_v22, %v263_v22 }
  0x1e   : > { %v260_v38 = vld [vmem:[%s680_s24 + $0x60] sm:$0xff]  ;;  %v261_v39 = vld [vmem:[%s680_s24 + $0x68] sm:$0xff]  ;;  %v262_v40 = vld [vmem:[%s680_s24 + $0x70] sm:$0xff]  ;;  %v272_v41 = vsub.f32 %v242_v10, %v257_v31  ;;  %v273_v42 = vsub.f32 %v243_v11, %v258_v32  ;;  %v274_v43 = vsub.f32 %v244_v12, %v259_v33  ;;  %v699_v44 = vmul.f32 %v264_v23, %v264_v23 }
  0x1f   : > { %v275_v45 = vsub.f32 %v245_v13, %v260_v38  ;;  %v276_v46 = vsub.f32 %v246_v14, %v261_v39  ;;  %v277_v47 = vsub.f32 %v247_v15, %v262_v40  ;;  %v701_v48 = vmul.f32 %v265_v24, %v265_v24  ;;  %v301_v3 = vld [vmem:[#allocation2 + $0x18] sm:$0xff] (!%p568_p5)  ;;  %v302_v4 = vld [vmem:[#allocation2 + $0x20] sm:$0xff] (!%p568_p5)  ;;  %v303_v5 = vld [vmem:[#allocation2 + $0x28] sm:$0xff] (!%p568_p5) }
  0x20   : > { %v703_v49 = vmul.f32 %v266_v28, %v266_v28  ;;  %v705_v50 = vmul.f32 %v267_v29, %v267_v29  ;;  %v707_v51 = vmul.f32 %v268_v30, %v268_v30  ;;  %v709_v52 = vmul.f32 %v269_v34, %v269_v34  ;;  %v304_v9 = vld [vmem:[#allocation2 + $0x30] sm:$0xff] (!%p568_p5)  ;;  %v305_v10 = vld [vmem:[#allocation2 + $0x38] sm:$0xff] (!%p568_p5)  ;;  %v306_v11 = vld [vmem:[#allocation2 + $0x40] sm:$0xff] (!%p568_p5) }
  0x21   : > { %v711_v53 = vmul.f32 %v270_v35, %v270_v35  ;;  %v713_v54 = vmul.f32 %v271_v36, %v271_v36  ;;  %v715_v55 = vmul.f32 %v272_v41, %v272_v41  ;;  %v717_v56 = vmul.f32 %v273_v42, %v273_v42  ;;  %v307_v15 = vld [vmem:[#allocation2 + $0x48] sm:$0xff] (!%p568_p5)  ;;  %v308_v16 = vld [vmem:[#allocation2 + $0x50] sm:$0xff] (!%p568_p5)  ;;  %v309_v17 = vld [vmem:[#allocation2 + $0x58] sm:$0xff] (!%p568_p5) }
  0x22   : > { %v719_v57 = vmul.f32 %v274_v43, %v274_v43  ;;  %v721_v58 = vmul.f32 %v275_v45, %v275_v45  ;;  %v723_v59 = vmul.f32 %v276_v46, %v276_v46  ;;  %v725_v60 = vmul.f32 %v277_v47, %v277_v47  ;;  %v310_v21 = vld [vmem:[#allocation2 + $0x60] sm:$0xff] (!%p568_p5)  ;;  %v311_v22 = vld [vmem:[#allocation2 + $0x68] sm:$0xff] (!%p568_p5)  ;;  %v312_v23 = vld [vmem:[#allocation2 + $0x70] sm:$0xff] (!%p568_p5) }
  0x23   : > { %v328_v0 = vadd.f32 %v298_v61, %v694_v37  ;;  %v329_v1 = vadd.f32 %v299_v62, %v699_v44  ;;  %v330_v2 = vadd.f32 %v300_v63, %v701_v48  ;;  %v331_v6 = vadd.f32 %v301_v3, %v703_v49 }
  0x24   : > { %v332_v7 = vadd.f32 %v302_v4, %v705_v50  ;;  %v333_v8 = vadd.f32 %v303_v5, %v707_v51  ;;  %v334_v12 = vadd.f32 %v304_v9, %v709_v52  ;;  %v335_v13 = vadd.f32 %v305_v10, %v711_v53 }
  0x25   : > { %343 = vst [vmem:[#allocation2] sm:$0xff] %v328_v0  ;;  %344 = vst [vmem:[#allocation2 + $0x8] sm:$0xff] %v329_v1  ;;  %v336_v14 = vadd.f32 %v306_v11, %v713_v54  ;;  %v337_v18 = vadd.f32 %v307_v15, %v715_v55  ;;  %v338_v19 = vadd.f32 %v308_v16, %v717_v56 }
  0x26   : > { %345 = vst [vmem:[#allocation2 + $0x10] sm:$0xff] %v330_v2  ;;  %346 = vst [vmem:[#allocation2 + $0x18] sm:$0xff] %v331_v6  ;;  %v339_v20 = vadd.f32 %v309_v17, %v719_v57  ;;  %v340_v24 = vadd.f32 %v310_v21, %v721_v58  ;;  %v341_v25 = vadd.f32 %v311_v22, %v723_v59 }
  0x27   : > { %347 = vst [vmem:[#allocation2 + $0x20] sm:$0xff] %v332_v7  ;;  %348 = vst [vmem:[#allocation2 + $0x28] sm:$0xff] %v333_v8  ;;  %v342_v26 = vadd.f32 %v312_v23, %v725_v60 }
  0x28   : > { %349 = vst [vmem:[#allocation2 + $0x30] sm:$0xff] %v334_v12  ;;  %350 = vst [vmem:[#allocation2 + $0x38] sm:$0xff] %v335_v13 }
  0x29   : > { %351 = vst [vmem:[#allocation2 + $0x40] sm:$0xff] %v336_v14  ;;  %352 = vst [vmem:[#allocation2 + $0x48] sm:$0xff] %v337_v18 }
  0x2a   : > { %353 = vst [vmem:[#allocation2 + $0x50] sm:$0xff] %v338_v19  ;;  %354 = vst [vmem:[#allocation2 + $0x58] sm:$0xff] %v339_v20 }
  0x2b   : > { %355 = vst [vmem:[#allocation2 + $0x60] sm:$0xff] %v340_v24  ;;  %356 = vst [vmem:[#allocation2 + $0x68] sm:$0xff] %v341_v25 }
  0x2c   : > { %357 = vst [vmem:[#allocation2 + $0x70] sm:$0xff] %v342_v26 }
  0x2d PF: > { %361 = sbr.rel (%p190_p4) target bundleno = 63 (0x3f), region = 40  ;;  %s570_s25 = sshll.u32 (!%p190_p4), %s615_s9, 3  ;;  %v363_v27 = vlaneseq (!%p190_p4)  ;;  %v367_v31 = vld [vmem:[#allocation2] sm:$0xff] (!%p190_p4)  ;;  %v368_v32 = vld [vmem:[#allocation2 + $0x8] sm:$0xff] (!%p190_p4)  ;;  %v369_v33 = vld [vmem:[#allocation2 + $0x10] sm:$0xff] (!%p190_p4) }
  0x2e   : > { %v365_v28 = vstv (!%p190_p4), %s570_s25  ;;  %v370_v34 = vld [vmem:[#allocation2 + $0x18] sm:$0xff] (!%p190_p4)  ;;  %v371_v35 = vld [vmem:[#allocation2 + $0x20] sm:$0xff] (!%p190_p4)  ;;  %v372_v36 = vld [vmem:[#allocation2 + $0x28] sm:$0xff] (!%p190_p4) }
  0x2f   : > { %v364_v29 = vshrl.u32 (!%p190_p4), %v363_v27, 7  ;;  %v373_v42 = vld [vmem:[#allocation2 + $0x30] sm:$0xff] (!%p190_p4)  ;;  %v374_v43 = vld [vmem:[#allocation2 + $0x38] sm:$0xff] (!%p190_p4) }
  0x30   : > { %v375_v62 = vld [vmem:[#allocation2 + $0x40] sm:$0xff] (!%p190_p4)  ;;  %v376_v63 = vld [vmem:[#allocation2 + $0x48] sm:$0xff] (!%p190_p4) }
  0x31   : > { %v366_v30 = vadd.s32 (!%p190_p4), %v365_v28, %v364_v29  ;;  %v377_v0 = vld [vmem:[#allocation2 + $0x50] sm:$0xff] (!%p190_p4)  ;;  %v378_v1 = vld [vmem:[#allocation2 + $0x58] sm:$0xff] (!%p190_p4) }
  0x32   : > { %v380_v7 = vld [vmem:[#allocation2 + $0x68] sm:$0xff] (!%p190_p4) }
  0x33   : > { %vm382_vm0 = vcmp.lt.s32.totalorder (!%p190_p4), %v366_v30, 12  ;;  %v381_v8 = vld [vmem:[#allocation2 + $0x70] sm:$0xff] (!%p190_p4) }
  0x34   : > { %v383_v38 = vsel %vm382_vm0, %v694_v37, 0.0  ;;  %v384_v39 = vsel %vm382_vm0, %v699_v44, 0.0  ;;  %v385_v40 = vsel %vm382_vm0, %v701_v48, 0.0  ;;  %v386_v41 = vsel %vm382_vm0, %v703_v49, 0.0 }
  0x35   : > { %v413_v45 = vadd.f32 %v383_v38, %v367_v31  ;;  %v414_v46 = vadd.f32 %v384_v39, %v368_v32  ;;  %v415_v47 = vadd.f32 %v385_v40, %v369_v33  ;;  %v416_v61 = vadd.f32 %v386_v41, %v370_v34 }
  0x36   : > { %v387_v37 = vsel %vm382_vm0, %v705_v50, 0.0  ;;  %v388_v44 = vsel %vm382_vm0, %v707_v51, 0.0  ;;  %v389_v48 = vsel %vm382_vm0, %v709_v52, 0.0  ;;  %v390_v49 = vsel %vm382_vm0, %v711_v53, 0.0  ;;  %v379_v50 = vld [vmem:[#allocation2 + $0x60] sm:$0xff] }
  0x37   : > { %428 = vst [vmem:[#allocation2] sm:$0xff] %v413_v45  ;;  %429 = vst [vmem:[#allocation2 + $0x8] sm:$0xff] %v414_v46  ;;  %v417_v2 = vadd.f32 %v387_v37, %v371_v35  ;;  %v418_v3 = vadd.f32 %v388_v44, %v372_v36  ;;  %v419_v4 = vadd.f32 %v389_v48, %v373_v42  ;;  %v391_v51 = vsel %vm382_vm0, %v713_v54, 0.0 }
  0x38   : > { %430 = vst [vmem:[#allocation2 + $0x10] sm:$0xff] %v415_v47  ;;  %431 = vst [vmem:[#allocation2 + $0x18] sm:$0xff] %v416_v61  ;;  %v420_v5 = vadd.f32 %v390_v49, %v374_v43  ;;  %v392_v52 = vsel %vm382_vm0, %v715_v55, 0.0  ;;  %v393_v53 = vsel %vm382_vm0, %v717_v56, 0.0  ;;  %v394_v6 = vsel %vm382_vm0, %v719_v57, 0.0 }
  0x39   : > { %432 = vst [vmem:[#allocation2 + $0x20] sm:$0xff] %v417_v2  ;;  %433 = vst [vmem:[#allocation2 + $0x28] sm:$0xff] %v418_v3  ;;  %v421_v9 = vadd.f32 %v391_v51, %v375_v62  ;;  %v422_v10 = vadd.f32 %v392_v52, %v376_v63  ;;  %v423_v11 = vadd.f32 %v393_v53, %v377_v0  ;;  %v395_v54 = vsel %vm382_vm0, %v721_v58, 0.0 }
  0x3a   : > { %434 = vst [vmem:[#allocation2 + $0x30] sm:$0xff] %v419_v4  ;;  %435 = vst [vmem:[#allocation2 + $0x38] sm:$0xff] %v420_v5  ;;  %v424_v12 = vadd.f32 %v394_v6, %v378_v1  ;;  %v396_v55 = vsel %vm382_vm0, %v723_v59, 0.0  ;;  %v397_v56 = vsel %vm382_vm0, %v725_v60, 0.0  ;;  %v425_v57 = vadd.f32 %v395_v54, %v379_v50 }
  0x3b   : > { %436 = vst [vmem:[#allocation2 + $0x40] sm:$0xff] %v421_v9  ;;  %437 = vst [vmem:[#allocation2 + $0x48] sm:$0xff] %v422_v10  ;;  %v426_v13 = vadd.f32 %v396_v55, %v380_v7  ;;  %v427_v14 = vadd.f32 %v397_v56, %v381_v8 }
  0x3c   : > { %438 = vst [vmem:[#allocation2 + $0x50] sm:$0xff] %v423_v11  ;;  %439 = vst [vmem:[#allocation2 + $0x58] sm:$0xff] %v424_v12 }
  0x3d   : > { %440 = vst [vmem:[#allocation2 + $0x60] sm:$0xff] %v425_v57  ;;  %441 = vst [vmem:[#allocation2 + $0x68] sm:$0xff] %v426_v13 }
  0x3e   : > { %442 = vst [vmem:[#allocation2 + $0x70] sm:$0xff] %v427_v14 }
  0x3f PF: > { %v446_v15 = vld [vmem:[#allocation2] sm:$0xff]  ;;  %v447_v16 = vld [vmem:[#allocation2 + $0x8] sm:$0xff]  ;;  %v448_v58 = vld [vmem:[#allocation2 + $0x10] sm:$0xff]  ;;  %vm486_vm1 = vcmask 0  }
  0x40   : > { %v461_v17 = vadd.f32 %v447_v16, %v446_v15  ;;  %v449_v18 = vld [vmem:[#allocation2 + $0x18] sm:$0xff]  ;;  %v450_v19 = vld [vmem:[#allocation2 + $0x20] sm:$0xff]  ;;  %v451_v60 = vld [vmem:[#allocation2 + $0x28] sm:$0xff] }
  0x41   : > { %v452_v22 = vld [vmem:[#allocation2 + $0x30] sm:$0xff]  ;;  %v453_v24 = vld [vmem:[#allocation2 + $0x38] sm:$0xff] }
  0x42   : > { %v462_v59 = vadd.f32 %v461_v17, %v448_v58  ;;  %v454_v26 = vld [vmem:[#allocation2 + $0x40] sm:$0xff]  ;;  %v455_v28 = vld [vmem:[#allocation2 + $0x48] sm:$0xff] }
  0x43   : > { %v456_v30 = vld [vmem:[#allocation2 + $0x50] sm:$0xff]  ;;  %v457_v32 = vld [vmem:[#allocation2 + $0x58] sm:$0xff] }
  0x44   : > { %v463_v20 = vadd.f32 %v462_v59, %v449_v18  ;;  %v458_v34 = vld [vmem:[#allocation2 + $0x60] sm:$0xff]  ;;  %v459_v36 = vld [vmem:[#allocation2 + $0x68] sm:$0xff] }
  0x45   : > { %v460_v39 = vld [vmem:[#allocation2 + $0x70] sm:$0xff] }
  0x46   : > { %v464_v21 = vadd.f32 %v463_v20, %v450_v19 }
  0x48   : > { %v465_v23 = vadd.f32 %v464_v21, %v451_v60 }
  0x4a   : > { %v466_v25 = vadd.f32 %v465_v23, %v452_v22 }
  0x4c   : > { %v467_v27 = vadd.f32 %v466_v25, %v453_v24 }
  0x4e   : > { %v468_v29 = vadd.f32 %v467_v27, %v454_v26 }
  0x50   : > { %v469_v31 = vadd.f32 %v468_v29, %v455_v28 }
  0x52   : > { %v470_v33 = vadd.f32 %v469_v31, %v456_v30 }
  0x54   : > { %v471_v35 = vadd.f32 %v470_v33, %v457_v32 }
  0x56   : > { %v472_v38 = vadd.f32 %v471_v35, %v458_v34 }
  0x58   : > { %v473_v40 = vadd.f32 %v472_v38, %v459_v36 }
  0x5a   : > { %v474_v41 = vadd.f32 %v473_v40, %v460_v39 }
  0x5c   : > { %475 = vadd.xlane.f32.xlu0 %v474_v41 }
  0xe9   : > { %v476_v42 = vpop.xlane.xlu0 %475 }
  0xea   : > { %v477_v43 = vrot.slane %v476_v42, 4 }
  0xec   : > { %v478_v45 = vadd.f32 %v477_v43, %v476_v42 }
  0xee   : > { %v479_v46 = vrot.slane %v478_v45, 2 }
  0xf0   : > { %v480_v47 = vadd.f32 %v479_v46, %v478_v45 }
  0xf2   : > { %v481_v61 = vrot.slane %v480_v47, 1 }
  0xf4   : > { %v482_v62 = vadd.f32 %v481_v61, %v480_v47 }
  0xf6   : > { %574 = vpush %v482_v62 }
 0x127   : > { %s575_s26 = spop %574 }
 0x128   : > { %s484_s27 = smul.f32 4.340278e-05, %s575_s26 }
 0x12a   : > { %v485_v63 = vstv %s484_s27 }
 0x12b   : > { %487 = vst.msk [vmem:[%s213_s17] sm:$0x1] %vm486_vm1, %v485_v63 }
 0x12c PF: > { %s12_s11 = sadd.s32 1, %s623_s11   ;;  %s793_s9 = smov %s619_s10 }
 0x12d   : > { %p9_p6 = scmp.ge.s32.totalorder %s12_s11, 4   ;;  %s794_s10 = smov %s796_s12 }
 0x12f   :  { %11 = sbr.rel (!%p9_p6) target bundleno = 2 (0x2), region = 77 }

</bundles_post_ra>
